<compile_context>
chip_gen: v7x
topology: tpu7x:2x2x1
jax: 0.10.0
libtpu: 0.0.40
codegen_flags: <defaults>
</compile_context>

<pallas_src>
import math

import jax
import jax.numpy as jnp
from jax.experimental import pallas as pl
from jax.experimental.pallas import tpu as pltpu


def _round_up(x, m):
    return ((x + m - 1) // m) * m


def _make_layernorm_kernel(h_real, h_pad, eps):
    """Build a kernel closed over static hidden sizes and eps."""
    need_mask = h_pad != h_real
    inv_h = 1.0 / float(h_real)

    def kernel(x_ref, gamma_ref, beta_ref, o_ref):
        # x_ref: (TR, H_pad) tile; gamma/beta: (1, H_pad) resident blocks.
        x = x_ref[...].astype(jnp.float32)
        if need_mask:
            lane = jax.lax.broadcasted_iota(jnp.int32, x.shape, dimension=1)
            mask = lane < h_real
            x = jnp.where(mask, x, 0.0)
        # Two-pass (centered) variance for numerical robustness; sums divided
        # by the *real* hidden size so padded lanes don't bias the statistics.
        u = jnp.sum(x, axis=-1, keepdims=True) * inv_h
        xc = x - u
        if need_mask:
            xc = jnp.where(mask, xc, 0.0)
        s = jnp.sum(xc * xc, axis=-1, keepdims=True) * inv_h
        inv = jax.lax.rsqrt(s + eps)
        y = xc * inv
        out = (gamma_ref[...].astype(jnp.float32) * y
               + beta_ref[...].astype(jnp.float32))
        o_ref[...] = out.astype(o_ref.dtype)

    return kernel


def _choose_row_tile(rows, h_pad, itemsize):
    """Pick a row tile sized against a ~2 MiB input block (mem-bound sweet spot)."""
    target_block_bytes = 2 * 1024 * 1024
    # f32 temporaries dominate inside the block, so budget with >=4 B/elem.
    tr = target_block_bytes // (h_pad * max(int(itemsize), 4))
    # Sublane packing: 8 rows for 32-bit, 16 for bf16, 32 for 8-bit dtypes.
    sub = max(8, 32 // max(int(itemsize), 1))
    tr = max(sub, min(1024, int(tr)))
    tr = (tr // sub) * sub
    # Don't tile past the (sublane-rounded) row count.
    tr = min(tr, _round_up(rows, sub))
    return max(tr, sub)


def layer_norm(x, gamma, beta, *, eps=1e-12):
    """LayerNorm over the last axis of x (matches the PyTorch module)."""
    orig_shape = x.shape
    hidden = orig_shape[-1]
    rows = 1
    for d in orig_shape[:-1]:
        rows *= int(d)
    rows = max(rows, 1)

    itemsize = jnp.dtype(x.dtype).itemsize
    h_pad = _round_up(hidden, 128)

    x2 = x.reshape(rows, hidden)
    g2 = gamma.reshape(1, hidden).astype(x.dtype)
    b2 = beta.reshape(1, hidden).astype(x.dtype)
    if h_pad != hidden:
        x2 = jnp.pad(x2, ((0, 0), (0, h_pad - hidden)))
        g2 = jnp.pad(g2, ((0, 0), (0, h_pad - hidden)))
        b2 = jnp.pad(b2, ((0, 0), (0, h_pad - hidden)))

    tr = _choose_row_tile(rows, h_pad, itemsize)
    rows_pad = _round_up(rows, tr)
    if rows_pad != rows:
        x2 = jnp.pad(x2, ((0, rows_pad - rows), (0, 0)))

    grid = (rows_pad // tr,)

    out = pl.pallas_call(
        _make_layernorm_kernel(hidden, h_pad, eps),
        out_shape=jax.ShapeDtypeStruct((rows_pad, h_pad), x.dtype),
        grid_spec=pltpu.PrefetchScalarGridSpec(
            num_scalar_prefetch=0,
            grid=grid,
            in_specs=[
                pl.BlockSpec((tr, h_pad), lambda i: (i, 0)),
                pl.BlockSpec((1, h_pad), lambda i: (0, 0)),
                pl.BlockSpec((1, h_pad), lambda i: (0, 0)),
            ],
            out_specs=pl.BlockSpec((tr, h_pad), lambda i: (i, 0)),
        ),
        compiler_params=pltpu.CompilerParams(
            dimension_semantics=("parallel",),
            vmem_limit_bytes=32 * 1024 * 1024,
        ),
    )(x2, g2, b2)

    return out[:rows, :hidden].reshape(orig_shape)


def _reference(x, gamma, beta, eps=1e-12):
    u = jnp.mean(x, axis=-1, keepdims=True)
    s = jnp.mean((x - u) ** 2, axis=-1, keepdims=True)
    return gamma * ((x - u) / jnp.sqrt(s + eps)) + beta


if __name__ == "__main__":
    key = jax.random.PRNGKey(0)

    # Small shape consistent with the module's forward: (batch, seq, hidden).
    batch, seq, hidden = 2, 8, 32
    x = jax.random.normal(key, (batch, seq, hidden), dtype=jnp.float32)
    gamma = jnp.ones((hidden,), dtype=jnp.float32)   # nn.Parameter(ones)
    beta = jnp.zeros((hidden,), dtype=jnp.float32)   # nn.Parameter(zeros)

    y = layer_norm(x, gamma, beta)
    jax.block_until_ready(y)
    ref = _reference(x, gamma, beta)
    assert jnp.allclose(y, ref, atol=1e-5, rtol=1e-5), "mismatch vs reference (H=32)"

    # Extra check: lane-aligned hidden + ragged row count (exercises padding path).
    k2 = jax.random.PRNGKey(1)
    x2 = jax.random.normal(k2, (3, 5, 256), dtype=jnp.float32)
    g2 = 1.0 + 0.01 * jax.random.normal(jax.random.PRNGKey(2), (256,), dtype=jnp.float32)
    b2 = 0.01 * jax.random.normal(jax.random.PRNGKey(3), (256,), dtype=jnp.float32)
    y2 = layer_norm(x2, g2, b2)
    jax.block_until_ready(y2)
    ref2 = _reference(x2, g2, b2)
    assert jnp.allclose(y2, ref2, atol=1e-5, rtol=1e-5), "mismatch vs reference (H=256)"

    print("KERNEL_OK")
</pallas_src>

<mosaic_0001>
module attributes {stable_mosaic.version = 11 : i64} {
  func.func @kernel(%arg0: i32, %arg1: memref<16x128xf32, #tpu.memory_space<vmem>>, %arg2: memref<1x128xf32, #tpu.memory_space<vmem>>, %arg3: memref<1x128xf32, #tpu.memory_space<vmem>>, %arg4: memref<16x128xf32, #tpu.memory_space<vmem>>) attributes {dimension_semantics = [#tpu.dimension_semantics<parallel>], iteration_bounds = array<i64: 1>, scalar_prefetch = 0 : i64, scratch_operands = 0 : i64, tpu.core_type = #tpu.core_type<tc>, window_params = [{transform_indices = @transform_0, window_bounds = array<i64: 16, 128>}, {pipeline_mode = #tpu.pipeline_mode<synchronous>, transform_indices = @transform_1, window_bounds = array<i64: 1, 128>}, {pipeline_mode = #tpu.pipeline_mode<synchronous>, transform_indices = @transform_2, window_bounds = array<i64: 1, 128>}, {transform_indices = @transform_3, window_bounds = array<i64: 16, 128>}]} {
    %c0 = arith.constant 0 : index
    %c0_0 = arith.constant 0 : index
    %0 = vector.load %arg1[%c0, %c0_0] : memref<16x128xf32, #tpu.memory_space<vmem>>, vector<16x128xf32>
    %1 = tpu.iota {dimensions = array<i32: 1>} : vector<16x128xi32>
    %c32_i32 = arith.constant 32 : i32
    %2 = vector.broadcast %c32_i32 : i32 to vector<16x128xi32>
    %3 = arith.cmpi slt, %1, %2 : vector<16x128xi32>
    %cst = arith.constant 0.000000e+00 : f32
    %4 = vector.broadcast %cst : f32 to vector<16x128xf32>
    %5 = arith.select %3, %0, %4 : vector<16x128xi1>, vector<16x128xf32>
    %cst_1 = arith.constant dense<0.000000e+00> : vector<16xf32>
    %6 = vector.multi_reduction <add>, %5, %cst_1 [1] : vector<16x128xf32> to vector<16xf32>
    %7 = vector.shape_cast %6 : vector<16xf32> to vector<16x1xf32>
    %cst_2 = arith.constant 3.125000e-02 : f32
    %8 = vector.broadcast %cst_2 : f32 to vector<16x1xf32>
    %9 = arith.mulf %7, %8 : vector<16x1xf32>
    %10 = vector.broadcast %9 : vector<16x1xf32> to vector<16x128xf32>
    %11 = arith.subf %5, %10 : vector<16x128xf32>
    %cst_3 = arith.constant 0.000000e+00 : f32
    %12 = vector.broadcast %cst_3 : f32 to vector<16x128xf32>
    %13 = arith.select %3, %11, %12 : vector<16x128xi1>, vector<16x128xf32>
    %14 = arith.mulf %13, %13 : vector<16x128xf32>
    %cst_4 = arith.constant dense<0.000000e+00> : vector<16xf32>
    %15 = vector.multi_reduction <add>, %14, %cst_4 [1] : vector<16x128xf32> to vector<16xf32>
    %16 = vector.shape_cast %15 : vector<16xf32> to vector<16x1xf32>
    %cst_5 = arith.constant 3.125000e-02 : f32
    %17 = vector.broadcast %cst_5 : f32 to vector<16x1xf32>
    %18 = arith.mulf %16, %17 : vector<16x1xf32>
    %cst_6 = arith.constant 9.99999996E-13 : f32
    %19 = vector.broadcast %cst_6 : f32 to vector<16x1xf32>
    %20 = arith.addf %18, %19 : vector<16x1xf32>
    %21 = math.rsqrt %20 : vector<16x1xf32>
    %22 = vector.broadcast %21 : vector<16x1xf32> to vector<16x128xf32>
    %23 = arith.mulf %13, %22 : vector<16x128xf32>
    %c0_7 = arith.constant 0 : index
    %c0_8 = arith.constant 0 : index
    %24 = vector.load %arg2[%c0_7, %c0_8] : memref<1x128xf32, #tpu.memory_space<vmem>>, vector<1x128xf32>
    %25 = vector.broadcast %24 : vector<1x128xf32> to vector<16x128xf32>
    %26 = arith.mulf %25, %23 : vector<16x128xf32>
    %c0_9 = arith.constant 0 : index
    %c0_10 = arith.constant 0 : index
    %27 = vector.load %arg3[%c0_9, %c0_10] : memref<1x128xf32, #tpu.memory_space<vmem>>, vector<1x128xf32>
    %28 = vector.broadcast %27 : vector<1x128xf32> to vector<16x128xf32>
    %29 = arith.addf %26, %28 : vector<16x128xf32>
    %c0_11 = arith.constant 0 : index
    %c0_12 = arith.constant 0 : index
    %30 = vector.load %arg4[%c0_11, %c0_12] : memref<16x128xf32, #tpu.memory_space<vmem>>, vector<16x128xf32>
    tpu.vector_store %arg4[%c0_11, %c0_12], %29 {strides = array<i32>} : memref<16x128xf32, #tpu.memory_space<vmem>>, vector<16x128xf32>,
    return
  }
  func.func @transform_0(%arg0: i32) -> (i32, i32) {
    %c0_i32 = arith.constant 0 : i32
    %c0_i32_0 = arith.constant 0 : i32
    return %arg0, %c0_i32 : i32, i32
  }
  func.func @transform_1(%arg0: i32) -> (i32, i32) {
    %c0_i32 = arith.constant 0 : i32
    %c0_i32_0 = arith.constant 0 : i32
    %c0_i32_1 = arith.constant 0 : i32
    return %c0_i32, %c0_i32_0 : i32, i32
  }
  func.func @transform_2(%arg0: i32) -> (i32, i32) {
    %c0_i32 = arith.constant 0 : i32
    %c0_i32_0 = arith.constant 0 : i32
    %c0_i32_1 = arith.constant 0 : i32
    return %c0_i32, %c0_i32_0 : i32, i32
  }
  func.func @transform_3(%arg0: i32) -> (i32, i32) {
    %c0_i32 = arith.constant 0 : i32
    %c0_i32_0 = arith.constant 0 : i32
    return %arg0, %c0_i32 : i32, i32
  }
}

</mosaic_0001>

<bundles_post_ra>
// kernel: tpu_custom_call.1
= control target key start
LH: loop header
LB: loop body
LE: loop exit
PB: predicated region body
PF: predicated region fallthrough
CT: control target
= control target key end

     0   :  { %8 = vsyncpa [#allocation3], 0  ;;  %s219_s0 = inlined_call_operand.hbm [shape: f32[16,128], index: 0, kind: input, shape index: {}]   ;;  %s220_s1 = inlined_call_operand.vmem [shape: f32[1,128], index: 1, kind: input, shape index: {}]   ;;  %s221_s2 = inlined_call_operand.vmem [shape: f32[1,128], index: 2, kind: input, shape index: {}]   ;;  %s222_s3 = inlined_call_operand.hbm [shape: f32[16,128], index: 3, kind: output, shape index: {}]  }
   0x1   :  { %9 = vsyncpa [#allocation4], 0  ;;  %s155_s12 = smov [#allocation2]   ;;  %s107_s16 = scalar_lea.hbm %s219_s0, 256 }
   0x2   :  { %s15_s13 = sshll.u32 %s155_s12, 4  ;;  %p108_p0 = scmp.ne.s32.totalorder %s219_s0, %s107_s16  ;;  %s16_s13 = int_to_ptr.vmem [resolvable:$true] %s15_s13 }
   0x3   :  { %p111_p1 = scmp.lt.u32.totalorder %s107_s16, %s219_s0 }
   0x5   :  { %p113_p2 = pnand %p111_p1, %p108_p0 }
   0x7   :  { %116 = shalt.err (!%p113_p2)
}
   0x8   :  { %s117_s21 = scalar_lea.vmem %s16_s13, 256  ;;  %p122_p4 = scmp.lt.s32.totalorder %s16_s13, %s16_s13 }
   0x9   :  { %p118_p3 = scmp.ne.s32.totalorder %s16_s13, %s117_s21  ;;  %p123_p5 = scmp.lt.s32.totalorder %s117_s21, %s117_s21 }
   0xb   :  { %p124_p6 = por %p123_p5, %p122_p4 }
   0xd   :  { %p125_p7 = pnand %p124_p6, %p118_p3 }
   0xf   :  { %128 = shalt.err (!%p125_p7)
}
  0x10   :  { %s156_s22 = smov 128   ;;  %s157_s23 = smov 8  }
  0x11   :  { %21 = dma.hbm_to_vmem [thread:$0]  %s219_s0, 256, %s16_s13, [#allocation3], %s156_s22, %s156_s22, %s157_s23  }
  0x12   :  { %151 = dma.done.wait [#allocation3], 256  }
  0x13   :  { %152 = vsyncadd [#allocation3], 4294967040  ;;  %v31_v0 = vlaneseq  ;;  %v29_v2 = vld [vmem:[#allocation2] sm:$0xff]  ;;  %v30_v3 = vld [vmem:[#allocation2 + $0x8] sm:$0xff]  ;;  %s158_s29 = smov [#allocation5]  }
  0x14   :  { %v97_v23 = vld [vmem:[%s220_s1] ss:$0 sm:$0xff]  ;;  %s85_s30 = sshll.u32 %s158_s29, 4  ;;  %s86_s30 = int_to_ptr.vmem [resolvable:$true] %s85_s30 }
  0x15   :  { %v32_v1 = vand.u32 127, %v31_v0  ;;  %v98_v25 = vld [vmem:[%s221_s2] ss:$0 sm:$0xff]  ;;  %s129_s4 = scalar_lea.vmem %s86_s30, 256  ;;  %p134_p9 = scmp.lt.s32.totalorder %s86_s30, %s86_s30 }
  0x16   :  { %p130_p8 = scmp.ne.s32.totalorder %s86_s30, %s129_s4  ;;  %p135_p10 = scmp.lt.s32.totalorder %s129_s4, %s129_s4 }
  0x17   :  { %vm33_vm0 = vcmp.lt.s32.totalorder %v32_v1, 32 }
  0x18   :  { %v34_v4 = vsel %vm33_vm0, %v29_v2, 0.0  ;;  %v35_v5 = vsel %vm33_vm0, %v30_v3, 0.0  ;;  %p136_p11 = por %p135_p10, %p134_p9 }
  0x19   :  { %36 = vadd.xlane.f32.xlu0 %v34_v4 }
  0x1a   :  { %p137_p12 = pnand %p136_p11, %p130_p8 }
  0x1d   :  { %38 = vadd.xlane.f32.xlu0 %v35_v5 }
  0xa6   :  { %v37_v6 = vpop.xlane.xlu0 %36 }
  0xa7   :  { %v40_v7 = vmul.f32 0.03125, %v37_v6 }
  0xa9   :  { %v42_v8 = vsub.f32 %v34_v4, %v40_v7 }
  0xaa   :  { %v39_v9 = vpop.xlane.xlu0 %38 }
  0xab   :  { %v41_v10 = vmul.f32 0.03125, %v39_v9  ;;  %v44_v11 = vsel %vm33_vm0, %v42_v8, 0.0 }
  0xac   :  { %v46_v12 = vmul.f32 %v44_v11, %v44_v11 }
  0xad   :  { %v43_v13 = vsub.f32 %v35_v5, %v41_v10 }
  0xae   :  { %48 = vadd.xlane.f32.xlu1 %v46_v12 }
  0xaf   :  { %v45_v14 = vsel %vm33_vm0, %v43_v13, 0.0 }
  0xb0   :  { %v47_v15 = vmul.f32 %v45_v14, %v45_v14 }
  0xb2   :  { %50 = vadd.xlane.f32.xlu1 %v47_v15 }
 0x13b   :  { %v49_v16 = vpop.xlane.xlu1 %48 }
 0x13c   :  { %v52_v17 = vmul.f32 0.03125, %v49_v16 }
 0x13e   :  { %v54_v18 = vadd.f32 1e-12, %v52_v17 }
 0x13f   :  { %v51_v19 = vpop.xlane.xlu1 %50 }
 0x140   :  { %103 = vrsqrt.f32 %v54_v18  ;;  %v53_v20 = vmul.f32 0.03125, %v51_v19 }
 0x142   :  { %v55_v21 = vadd.f32 1e-12, %v53_v20 }
 0x144   :  { %105 = vrsqrt.f32 %v55_v21 }
 0x14a   :  { %v104_v22 = vpop.eup %103 }
 0x14b   :  { %v58_v24 = vmul.f32 %v104_v22, %v44_v11 }
 0x14d   :  { %v67_v26 = vmul.f32 %v97_v23, %v58_v24 }
 0x14e   :  { %v106_v27 = vpop.eup %105 }
 0x14f   :  { %v59_v28 = vmul.f32 %v106_v27, %v45_v14  ;;  %v76_v29 = vadd.f32 %v98_v25, %v67_v26 }
 0x151   :  { %v68_v30 = vmul.f32 %v97_v23, %v59_v28  ;;  %78 = vst [vmem:[#allocation5] sm:$0xff] %v76_v29 }
 0x153   :  { %v77_v31 = vadd.f32 %v98_v25, %v68_v30 }
 0x155   :  { %79 = vst [vmem:[#allocation5 + $0x8] sm:$0xff] %v77_v31 }
 0x156   :  { %140 = shalt.err (!%p137_p12)
}
 0x157   :  { %s141_s5 = scalar_lea.hbm %s222_s3, 256 }
 0x158   :  { %p142_p13 = scmp.ne.s32.totalorder %s222_s3, %s141_s5  ;;  %p145_p0 = scmp.lt.u32.totalorder %s141_s5, %s222_s3 }
 0x15a   :  { %p147_p1 = pnand %p145_p0, %p142_p13 }
 0x15c   :  { %150 = shalt.err (!%p147_p1)
}
 0x15d   :  { %91 = dma.vmem_to_hbm [thread:$0]  %s86_s30, 256, %s222_s3, [#allocation4], %s156_s22, %s156_s22, %s157_s23  }
 0x15e   :  { %153 = dma.done.wait [#allocation4], 256  }
 0x15f   :  { %154 = vsyncadd [#allocation4], 4294967040 }
 0x160   :  { %95 = vsyncpa [#allocation3], 1 }
 0x161   :  { %96 = vsyncpa [#allocation4], 1 }

</bundles_post_ra>
